<compile_context>
chip_gen: v6e
topology: v6e:2x2x1
jax: 0.10.0
libtpu: 0.0.40
codegen_flags: <defaults>
</compile_context>

<pallas_src>
from functools import partial

import jax
import jax.numpy as jnp
from jax.experimental import pallas as pl
from jax.experimental.pallas import tpu as pltpu

# ---- problem sizes (small, consistent with the module's shape conventions) --
NQ, NV = 4, 4
NX = NQ + NV            # state dim           = 8
NA = 4                  # action dim          = 4
NXA = NX + NA           # per-step sol dim    = 12
HORIZON = 8             # plan_horizon
N_PARTICLES = 4
POP_SIZE = 8
P = POP_SIZE * N_PARTICLES   # 32 rollout samples per timestep
HP = HORIZON * P             # 256 -> lane dimension (2 full vregs wide)

assert (P & (P - 1)) == 0 and (N_PARTICLES & (N_PARTICLES - 1)) == 0
P_SHIFT = P.bit_length() - 1            # log2(P)  = 5
NP_SHIFT = N_PARTICLES.bit_length() - 1  # log2(NP) = 2
INV_NP = 1.0 / N_PARTICLES
SQRT_ACTION_W = 0.1 ** 0.5              # sqrt(0.1) for folded action cost
HIGHEST = jax.lax.Precision.HIGHEST


# ----------------------------- Pallas kernel --------------------------------
def _mscem_cost_kernel(slab_ref, w_ref, out_ref, sum_ref):
    """Single invocation: all H horizon steps processed at once.

    slab_ref: (NXA+NX, HP) rows [0:NX]=x^T, [NX:NXA]=a^T, [NXA:]=sol_x[t+1]^T
              (zero pad for t = H-1); column c = t*P + pop*NP + particle.
    w_ref:    (NX, NXA)  fused dynamics weights [Ad; Bd]^T
    out_ref:  (POP, H)   costs
    sum_ref:  (POP, 1)   per-sample cost summed over horizon (for the CEM loop)
    """
    slab = slab_ref[...]                                              # (20, HP)
    xa = slab[:NXA, :]                                                # (NXA, HP)
    a = slab[NX:NXA, :]                                               # (NA, HP)
    xn = slab[NXA:, :]                                                # (NX, HP)

    # TODO(synk): dynamics.sample_predictions is a stochastic ensemble model in
    # the reference; here a deterministic linear dynamics is used per particle.
    pred = jnp.dot(w_ref[...], xa,
                   preferred_element_type=jnp.float32,
                   precision=HIGHEST)                                 # (NX, HP)

    # quadratic task cost on (prediction.x, a), folded into one sublane reduce:
    # sum(pred^2) + 0.1*sum(a^2) == sum([pred; sqrt(0.1)*a]^2)
    stacked = jnp.concatenate([pred, a * SQRT_ACTION_W], axis=0)      # (NXA, HP)
    cost = jnp.sum(stacked * stacked, axis=0, keepdims=True)          # (1, HP)

    # multi-shooting gap cost; last horizon step contributes zero gap
    # (mask applied before sqrt/exp, so the zero-padded xn slab is irrelevant).
    col = jax.lax.broadcasted_iota(jnp.int32, (1, HP), 1)
    gmask = (col < (HORIZON - 1) * P).astype(jnp.float32)             # (1, HP)
    gap = pred - xn                                                   # (NX, HP)
    gap_sq = jnp.sum(gap * gap, axis=0, keepdims=True) * gmask        # (1, HP)
    gap_cost = jnp.exp(jnp.sqrt(gap_sq)) - 1.0                        # (1, HP)

    total = cost + gap_cost                                           # (1, HP)

    # constant selection matrices generated in-kernel (pure functions of the
    # static layout): popmask[pop, c] = 1/NP if pop(c)==pop, tsel[c,t] = t(c)==t.
    lane = jax.lax.broadcasted_iota(jnp.int32, (POP_SIZE, HP), 1)
    row = jax.lax.broadcasted_iota(jnp.int32, (POP_SIZE, HP), 0)
    pop_of_c = (lane & (P - 1)) >> NP_SHIFT
    popmask = jnp.where(pop_of_c == row,
                        jnp.float32(INV_NP), jnp.float32(0.0))        # (POP, HP)

    crow = jax.lax.broadcasted_iota(jnp.int32, (HP, HORIZON), 0)
    tcol = jax.lax.broadcasted_iota(jnp.int32, (HP, HORIZON), 1)
    tsel = jnp.where((crow >> P_SHIFT) == tcol,
                     jnp.float32(1.0), jnp.float32(0.0))              # (HP, H)

    # particle mean + (pop, horizon) layout in one MXU matmul:
    # out[pop, t] = sum_c total[c] * popmask[pop, c] * tsel[c, t]
    weighted = total * popmask                                        # (POP, HP)
    costs = jnp.dot(weighted, tsel,
                    preferred_element_type=jnp.float32,
                    precision=HIGHEST)                                # (POP, H)
    out_ref[...] = costs
    sum_ref[...] = jnp.sum(costs, axis=1, keepdims=True)              # (POP, 1)


# ----------------------------- wrapper (glue) --------------------------------
def _reshape_sol(sol, obs):
    """Replicates MSCEMCost.reshape_sol + obs overwrite of sol_x[0]."""
    H = HORIZON
    sol3 = sol.reshape(POP_SIZE, H, NXA).transpose(1, 0, 2)          # (H, pop, nxa)
    tiled = jnp.broadcast_to(
        sol3[:, :, None, :], (H, POP_SIZE, N_PARTICLES, NXA)
    ).reshape(H, P, NXA)                                             # (H, P, nxa)
    sol_x = tiled[:, :, :NX]
    sol_a = tiled[:, :, NX:]
    sol_x = sol_x.at[0].set(jnp.broadcast_to(obs[None, :], (P, NX)))
    return sol_x, sol_a


def _build_slab(sol, obs):
    """Lane-dense merged (NXA+NX, HP) slab: rows [x; a; next_x]."""
    sol_x, sol_a = _reshape_sol(sol, obs)
    xn = jnp.concatenate(
        [sol_x[1:], jnp.zeros((1, P, NX), sol_x.dtype)], axis=0)     # (H, P, NX)
    slab = jnp.concatenate([sol_x, sol_a, xn], axis=-1)              # (H, P, 20)
    return slab.reshape(HP, NXA + NX).T.astype(jnp.float32)          # (20, HP)


@jax.jit
def _mscem_pallas(sol, obs, Ad, Bd):
    """Runs the Pallas kernel; returns ((POP, H) costs, (POP, 1) summed costs)."""
    slab = _build_slab(sol, obs)
    # fused dynamics weight: pred^T = W^T @ XA^T with W = [Ad; Bd]
    w_t = jnp.concatenate([Ad, Bd], axis=0).T.astype(jnp.float32)    # (NX, NXA)

    return pl.pallas_call(
        _mscem_cost_kernel,
        out_shape=(jax.ShapeDtypeStruct((POP_SIZE, HORIZON), jnp.float32),
                   jax.ShapeDtypeStruct((POP_SIZE, 1), jnp.float32)),
        in_specs=[pl.BlockSpec(memory_space=pltpu.MemorySpace.VMEM),
                  pl.BlockSpec(memory_space=pltpu.MemorySpace.VMEM)],
        out_specs=(pl.BlockSpec(memory_space=pltpu.MemorySpace.VMEM),
                   pl.BlockSpec(memory_space=pltpu.MemorySpace.VMEM)),
        compiler_params=pltpu.CompilerParams(
            allow_input_fusion=[True, True]),
    )(slab, w_t)


def mscem_cost(sol, obs, Ad, Bd):
    """MSCEMCost.forward: sol (POP_SIZE, HORIZON*NXA), obs (NX,) -> (POP_SIZE, HORIZON)."""
    costs, _ = _mscem_pallas(sol, obs, Ad, Bd)
    return costs


def mscem_cost_ref(sol, obs, Ad, Bd):
    """Pure-JAX reference of MSCEMCost.forward (L = 1), HIGHEST-precision matmuls."""
    H = HORIZON
    sol_x, sol_a = _reshape_sol(sol, obs)
    cols = []
    for t in range(H):
        x, a = sol_x[t], sol_a[t]
        pred = (jnp.dot(x, Ad, precision=HIGHEST)
                + jnp.dot(a, Bd, precision=HIGHEST))
        cost = jnp.sum(pred ** 2, 1) + 0.1 * jnp.sum(a ** 2, 1)
        col = cost.reshape(POP_SIZE, N_PARTICLES).mean(1)
        gap = pred - sol_x[t + 1] if t < H - 1 else jnp.zeros_like(pred)
        gc = jnp.exp(jnp.linalg.norm(gap, axis=1)) - 1.0
        col = col + gc.reshape(POP_SIZE, N_PARTICLES).mean(1)
        cols.append(col)
    return jnp.stack(cols, axis=1)


@partial(jax.jit, static_argnames=("n_iters", "n_elites"))
def mscem_forward(obs, Ad, Bd, key, n_iters=3, n_elites=4):
    """MSCEM.forward(x): CEM open-loop planning, returns first action.

    # TODO(synk): the CEM optimizer class is not given in the reference; this is
    # a minimal deterministic CEM loop whose cost evaluation is the Pallas kernel.
    """
    state_lb, state_ub = -jnp.ones(NX), jnp.ones(NX)
    action_lb, action_ub = -jnp.ones(NA), jnp.ones(NA)
    sol_lb = jnp.tile(jnp.concatenate([state_lb, action_lb]), HORIZON)
    sol_ub = jnp.tile(jnp.concatenate([state_ub, action_ub]), HORIZON)
    mean = (sol_lb + sol_ub) / 2.0                                   # prev_sol / init_sol
    var = (sol_ub - sol_lb) ** 2 / 16.0                              # init_var

    for _ in range(n_iters):
        key, sub = jax.random.split(key)
        samples = mean[None] + jnp.sqrt(var)[None] * jax.random.normal(
            sub, (POP_SIZE, HORIZON * NXA), jnp.float32)
        samples = jnp.clip(samples, sol_lb[None], sol_ub[None])
        # per-sample cost summed over the horizon, straight from the kernel
        _, cost_sum = _mscem_pallas(samples, obs, Ad, Bd)            # (POP, 1)
        elites = samples[jnp.argsort(cost_sum[:, 0])[:n_elites]]
        mean = elites.mean(0)
        var = elites.var(0) + 1e-6

    sol = mean
    a = sol[NX:NXA]                                                  # first action
    return a


# ----------------------------------- main ------------------------------------
if __name__ == "__main__":
    key = jax.random.PRNGKey(0)
    k1, k2, k3, k4 = jax.random.split(key, 4)

    # deterministic synthetic parameters (linear dynamics + cost weights)
    Ad = 0.5 * jnp.eye(NX, dtype=jnp.float32) \
        + 0.02 * jax.random.normal(k1, (NX, NX), jnp.float32)
    Bd = 0.05 * jax.random.normal(k2, (NA, NX), jnp.float32)
    obs = 0.3 * jax.random.normal(k3, (NX,), jnp.float32)
    sol = jax.random.uniform(k4, (POP_SIZE, HORIZON * NXA), jnp.float32, -1.0, 1.0)

    costs = jax.block_until_ready(mscem_cost(sol, obs, Ad, Bd))
    costs_ref = mscem_cost_ref(sol, obs, Ad, Bd)
    assert costs.shape == (POP_SIZE, HORIZON)
    assert bool(jnp.all(jnp.isfinite(costs)))
    # both kernel matmuls run at HIGHEST precision now -> ~f32-exact vs reference
    assert jnp.allclose(costs, costs_ref, rtol=1e-3, atol=1e-3), \
        float(jnp.max(jnp.abs(costs - costs_ref)))

    # kernel-side horizon sum matches the summed costs matrix
    _, cost_sum = _mscem_pallas(sol, obs, Ad, Bd)
    assert jnp.allclose(cost_sum[:, 0], costs.sum(axis=1), rtol=1e-5, atol=1e-5)

    a = jax.block_until_ready(mscem_forward(obs, Ad, Bd, key))
    assert a.shape == (NA,)
    assert bool(jnp.all(jnp.isfinite(a)))
    print("KERNEL_OK")
</pallas_src>

<mosaic_0001>
module attributes {stable_mosaic.version = 11 : i64} {
  func.func @_mscem_cost_kernel(%arg0: memref<20x256xf32, #tpu.memory_space<vmem>>, %arg1: memref<8x12xf32, #tpu.memory_space<vmem>>, %arg2: memref<8x8xf32, #tpu.memory_space<vmem>>, %arg3: memref<8x1xf32, #tpu.memory_space<vmem>>) attributes {dimension_semantics = [], scalar_prefetch = 0 : i64, scratch_operands = 0 : i64, tpu.core_type = #tpu.core_type<tc>} {
    %c0 = arith.constant 0 : index
    %c0_0 = arith.constant 0 : index
    %0 = vector.load %arg0[%c0, %c0_0] : memref<20x256xf32, #tpu.memory_space<vmem>>, vector<20x256xf32>
    %1 = vector.extract_strided_slice %0 {offsets = [0, 0], sizes = [12, 256], strides = [1, 1]} : vector<20x256xf32> to vector<12x256xf32>
    %2 = vector.extract_strided_slice %0 {offsets = [8, 0], sizes = [4, 256], strides = [1, 1]} : vector<20x256xf32> to vector<4x256xf32>
    %3 = vector.extract_strided_slice %0 {offsets = [12, 0], sizes = [8, 256], strides = [1, 1]} : vector<20x256xf32> to vector<8x256xf32>
    %c0_1 = arith.constant 0 : index
    %c0_2 = arith.constant 0 : index
    %4 = vector.load %arg1[%c0_1, %c0_2] : memref<8x12xf32, #tpu.memory_space<vmem>>, vector<8x12xf32>
    %cst = arith.constant dense<0.000000e+00> : vector<8x256xf32>
    %5 = tpu.matmul %4, %1, %cst {dimension_numbers = #tpu.dot_dimension_numbers<[1], [0], [0], [1], [0, 0, 1, 1], [], []>, precision = #tpu.contract_precision<fp32>} : vector<8x12xf32>, vector<12x256xf32>, vector<8x256xf32> -> vector<8x256xf32>
    %cst_3 = arith.constant 0.316227764 : f32
    %6 = vector.broadcast %cst_3 : f32 to vector<4x256xf32>
    %7 = arith.mulf %2, %6 : vector<4x256xf32>
    %8 = tpu.concatenate %5, %7 in 0 : vector<8x256xf32>, vector<4x256xf32> -> vector<12x256xf32>
    %9 = arith.mulf %8, %8 : vector<12x256xf32>
    %cst_4 = arith.constant dense<0.000000e+00> : vector<256xf32>
    %10 = vector.multi_reduction <add>, %9, %cst_4 [0] : vector<12x256xf32> to vector<256xf32>
    %11 = vector.shape_cast %10 : vector<256xf32> to vector<1x256xf32>
    %12 = tpu.iota {dimensions = array<i32: 1>} : vector<1x256xi32>
    %c224_i32 = arith.constant 224 : i32
    %13 = vector.broadcast %c224_i32 : i32 to vector<1x256xi32>
    %14 = arith.cmpi slt, %12, %13 : vector<1x256xi32>
    %15 = arith.extui %14 : vector<1x256xi1> to vector<1x256xi32>
    %16 = arith.sitofp %15 : vector<1x256xi32> to vector<1x256xf32>
    %17 = arith.subf %5, %3 : vector<8x256xf32>
    %18 = arith.mulf %17, %17 : vector<8x256xf32>
    %cst_5 = arith.constant dense<0.000000e+00> : vector<256xf32>
    %19 = vector.multi_reduction <add>, %18, %cst_5 [0] : vector<8x256xf32> to vector<256xf32>
    %20 = vector.shape_cast %19 : vector<256xf32> to vector<1x256xf32>
    %21 = arith.mulf %20, %16 : vector<1x256xf32>
    %22 = math.sqrt %21 : vector<1x256xf32>
    %23 = math.exp %22 : vector<1x256xf32>
    %cst_6 = arith.constant 1.000000e+00 : f32
    %24 = vector.broadcast %cst_6 : f32 to vector<1x256xf32>
    %25 = arith.subf %23, %24 : vector<1x256xf32>
    %26 = arith.addf %11, %25 : vector<1x256xf32>
    %27 = tpu.iota {dimensions = array<i32: 1>} : vector<8x256xi32>
    %28 = tpu.iota {dimensions = array<i32: 0>} : vector<8x256xi32>
    %c31_i32 = arith.constant 31 : i32
    %29 = vector.broadcast %c31_i32 : i32 to vector<8x256xi32>
    %30 = arith.andi %27, %29 : vector<8x256xi32>
    %c2_i32 = arith.constant 2 : i32
    %31 = vector.broadcast %c2_i32 : i32 to vector<8x256xi32>
    %32 = arith.shrsi %30, %31 : vector<8x256xi32>
    %33 = arith.cmpi eq, %32, %28 : vector<8x256xi32>
    %cst_7 = arith.constant 2.500000e-01 : f32
    %cst_8 = arith.constant 0.000000e+00 : f32
    %34 = vector.broadcast %cst_7 : f32 to vector<8x256xf32>
    %35 = vector.broadcast %cst_8 : f32 to vector<8x256xf32>
    %36 = arith.select %33, %34, %35 : vector<8x256xi1>, vector<8x256xf32>
    %37 = tpu.iota {dimensions = array<i32: 0>} : vector<256x8xi32>
    %38 = tpu.iota {dimensions = array<i32: 1>} : vector<256x8xi32>
    %c5_i32 = arith.constant 5 : i32
    %39 = vector.broadcast %c5_i32 : i32 to vector<256x8xi32>
    %40 = arith.shrsi %37, %39 : vector<256x8xi32>
    %41 = arith.cmpi eq, %40, %38 : vector<256x8xi32>
    %cst_9 = arith.constant 1.000000e+00 : f32
    %cst_10 = arith.constant 0.000000e+00 : f32
    %42 = vector.broadcast %cst_9 : f32 to vector<256x8xf32>
    %43 = vector.broadcast %cst_10 : f32 to vector<256x8xf32>
    %44 = arith.select %41, %42, %43 : vector<256x8xi1>, vector<256x8xf32>
    %45 = vector.broadcast %26 : vector<1x256xf32> to vector<8x256xf32>
    %46 = arith.mulf %45, %36 : vector<8x256xf32>
    %cst_11 = arith.constant dense<0.000000e+00> : vector<8x8xf32>
    %47 = tpu.matmul %46, %44, %cst_11 {dimension_numbers = #tpu.dot_dimension_numbers<[1], [0], [0], [1], [0, 0, 1, 1], [], []>, precision = #tpu.contract_precision<fp32>} : vector<8x256xf32>, vector<256x8xf32>, vector<8x8xf32> -> vector<8x8xf32>
    %c0_12 = arith.constant 0 : index
    %c0_13 = arith.constant 0 : index
    %48 = vector.load %arg2[%c0_12, %c0_13] : memref<8x8xf32, #tpu.memory_space<vmem>>, vector<8x8xf32>
    tpu.vector_store %arg2[%c0_12, %c0_13], %47 {strides = array<i32>} : memref<8x8xf32, #tpu.memory_space<vmem>>, vector<8x8xf32>,
    %cst_14 = arith.constant dense<0.000000e+00> : vector<8xf32>
    %49 = vector.multi_reduction <add>, %47, %cst_14 [1] : vector<8x8xf32> to vector<8xf32>
    %50 = vector.shape_cast %49 : vector<8xf32> to vector<8x1xf32>
    %c0_15 = arith.constant 0 : index
    %c0_16 = arith.constant 0 : index
    %51 = vector.load %arg3[%c0_15, %c0_16] : memref<8x1xf32, #tpu.memory_space<vmem>>, vector<8x1xf32>
    tpu.vector_store %arg3[%c0_15, %c0_16], %50 {strides = array<i32>} : memref<8x1xf32, #tpu.memory_space<vmem>>, vector<8x1xf32>,
    return
  }
}

</mosaic_0001>

<bundles_post_ra>
// kernel: _mscem_pallas.2
= control target key start
LH: loop header
LB: loop body
LE: loop exit
PB: predicated region body
PF: predicated region fallthrough
CT: control target
= control target key end

     0   :  { %s2886_s0 = inlined_call_operand.vmem [shape: f32[256,20], index: 0, kind: input, shape index: {}]   ;;  %s2887_s1 = inlined_call_operand.vmem [shape: f32[4,8], index: 1, kind: input, shape index: {}]   ;;  %s2888_s2 = inlined_call_operand.<no memory space> [shape: f32[], index: 2, kind: input, shape index: {}]   ;;  %s2889_s3 = inlined_call_operand.vmem [shape: f32[8,8], index: 3, kind: input, shape index: {}]   ;;  %s2890_s4 = inlined_call_operand.hbm [shape: f32[8,8], index: 4, kind: output, shape index: {0}]   ;;  %s2891_s5 = inlined_call_operand.vmem [shape: f32[8,1], index: 5, kind: output, shape index: {1}]  }
   0x1   :  { %v11_v0 = vstv %s2888_s2 }
   0x2   :  { %v85_v1 = vlaneseq  ;;  %v1927_v2 = vld [vmem:[%s2886_s0 + $0x18] sm:$0xff]  ;;  %vm2892_vm0 = vcmask 1043456   ;;  %v1932_v3 = vld [vmem:[%s2886_s0 + $0x10] sm:$0xff]  ;;  %v1539_v4 = vld [vmem:[%s2886_s0 + $0x8] sm:$0xff]  ;;  %v2925_v6 = vmov 0.0  }
   0x3   :  { %v47_v5 = vld [vmem:[%s2886_s0] sm:$0xff]  ;;  %291 = vmatprep.mubr.f32.mxu1 %v2925_v6  ;;  %195 = vmatprep.mubr.f32.mxu0 %v2925_v6  ;;  %v125_v8 = vsel %vm2892_vm0, %v1927_v2, 0  ;;  %v122_v9 = vsel %vm2892_vm0, %v1932_v3, 0  ;;  %v159_v10 = vand.u32 4294901760, %v1539_v4 }
   0x4   :  { %v1943_v7 = vand.u32 127, %v85_v1 }
   0x5   :  { %13 = vsyncpa [#allocation13], 0  ;;  %v155_v11 = vand.u32 4294901760, %v125_v8  ;;  %v157_v12 = vand.u32 4294901760, %v122_v9  ;;  %v161_v13 = vand.u32 4294901760, %v47_v5  ;;  %v84_v14 = vld [vmem:[%s2887_s1] sm:$0xff]  ;;  %v1955_v16 = vsub.f32 %v1539_v4, %v159_v10 }
   0x6   :  { %v1953_v15 = vadd.s32 128, %v1943_v7  ;;  %vm92_vm1 = vcmp.lt.s32.totalorder %v1943_v7, 120  ;;  %s1888_s1 = smov 8   ;;  %v96_v34 = vld [vmem:[%s2889_s3] sm:$0xff]  ;;  %vm100_vm3 = vcmp.lt.s32.totalorder %v1943_v7, 8  ;;  %vm116_vm4 = vcmask 97280  }
   0x7   :  { %v236_v17 = vsub.f32 %v125_v8, %v155_v11  ;;  %v242_v18 = vsub.f32 %v122_v9, %v157_v12  ;;  %v254_v19 = vsub.f32 %v47_v5, %v161_v13  ;;  %156 = vmatprep.subr.mxu0 %v155_v11  ;;  %v249_v20 = vand.u32 4294901760, %v1955_v16  ;;  %v1542_v44 = vld [vmem:[%s2886_s0 + $0x20] sm:$0xff]  ;;  %v1543_v45 = vld [vmem:[%s2886_s0 + $0x28] sm:$0xff]  ;;  %s1890_s0 = smov [#allocation12]  }
   0x8   :  { %vm88_vm2 = vcmp.lt.s32.totalorder %v1953_v15, 132  ;;  %158 = vmatpush1.msra.mxu0 %v157_v12  ;;  %v101_v35 = vsel %vm100_vm3, %v96_v34, %v11_v0  ;;  %74 = vst [vmem:[#allocation14 + $0x18] sm:$0xff] %v1542_v44  ;;  %80 = vst [vmem:[#allocation14 + $0x20] sm:$0xff] %v1543_v45  ;;  %v1977_v46 = vshrl.u32 %v85_v1, 7  ;;  %v3036_v53 = vmov 0  ;;  %s1521_s9 = sshll.u32 %s1890_s0, 4  ;;  %s1522_s9 = int_to_ptr.vmem [resolvable:$true] %s1521_s9 }
   0x9   :  { %v89_v21 = vsel %vm88_vm2, %v84_v14, %v11_v0  ;;  %v237_v22 = vand.u32 4294901760, %v236_v17  ;;  %v243_v23 = vand.u32 4294901760, %v242_v18  ;;  %160 = vmatprep.subr.mxu0 %v159_v10  ;;  %v250_v25 = vsub.f32 %v1955_v16, %v249_v20  ;;  %s1865_s10 = scalar_lea.vmem %s1522_s9, 128  ;;  %p1870_p1 = scmp.lt.s32.totalorder %s1522_s9, %s1522_s9 }
   0xa   :  { %v93_v24 = vsel %vm92_vm1, %v89_v21, %v11_v0  ;;  %v255_v26 = vand.u32 4294901760, %v254_v19  ;;  %162 = vmatpush1.msra.mxu0 %v161_v13  ;;  %v739_v47 = vadd.s32 248, %v1977_v46  ;;  %v723_v48 = vadd.s32 120, %v1977_v46  ;;  %p1866_p0 = scmp.ne.s32.totalorder %s1522_s9, %s1865_s10  ;;  %p1871_p2 = scmp.lt.s32.totalorder %s1865_s10, %s1865_s10 }
   0xb   :  { %94 = vrot.lane.b32.xlu0 %v93_v24, %s1888_s1  ;;  %v238_v27 = vsub.f32 %v236_v17, %v237_v22  ;;  %v244_v28 = vsub.f32 %v242_v18, %v243_v23  ;;  %329 = vmatprep.subr.mxu0 %v236_v17  ;;  %v251_v32 = vand.u32 4294901760, %v250_v25  ;;  %v738_v50 = vadd.s32 240, %v1977_v46 }
   0xc   :  { %v256_v29 = vsub.f32 %v254_v19, %v255_v26  ;;  %v771_v49 = vshra.s32 %v739_v47, 5  ;;  %v755_v51 = vshra.s32 %v723_v48, 5  ;;  %v722_v52 = vadd.s32 112, %v1977_v46  ;;  %p1872_p3 = por %p1871_p2, %p1870_p1 }
   0xd   :  { %v239_v30 = vand.u32 4294901760, %v238_v27  ;;  %v245_v31 = vand.u32 4294901760, %v244_v28  ;;  %v770_v54 = vshra.s32 %v738_v50, 5  ;;  %v737_v55 = vadd.s32 232, %v1977_v46 }
   0xe   :  { %v257_v33 = vand.u32 4294901760, %v256_v29  ;;  %vm1984_vm5 = vcmp.eq.s32.totalorder %v771_v49, %v1943_v7  ;;  %v721_v56 = vadd.s32 104, %v1977_v46  ;;  %vm1994_vm6 = vcmp.eq.s32.totalorder %v755_v51, %v1943_v7  ;;  %p1873_p4 = pnand %p1872_p3, %p1866_p0 }
   0xf   :  { %240 = vmatprep.subr.mxu1 %v239_v30  ;;  %v3037_v53 = vsel %vm1984_vm5, 4294967295, %v3036_v53  ;;  %v835_v57 = vsel %vm1984_vm5, 1.0, %v2925_v6  ;;  %v754_v59 = vshra.s32 %v722_v52, 5  ;;  %v736_v60 = vadd.s32 224, %v1977_v46 }
  0x10   :  { %246 = vmatpush1.msra.mxu1 %v245_v31  ;;  %3038 = vst [vmem:[#allocation17_spill] sm:$0xff] %v3037_v53  ;;  %v1999_v61 = vsub.f32 %v835_v57, %v835_v57  ;;  %v819_v62 = vsel %vm1994_vm6, 1.0, %v2925_v6  ;;  %vm2005_vm7 = vcmp.eq.s32.totalorder %v770_v54, %v1943_v7  ;;  %v769_v0 = vshra.s32 %v737_v55, 5 }
  0x11   :  { %252 = vmatprep.subr.mxu1 %v251_v32  ;;  %v2009_v1 = vsub.f32 %v819_v62, %v819_v62  ;;  %v834_v4 = vsel %vm2005_vm7, 1.0, %v2925_v6  ;;  %vm2015_vm8 = vcmp.eq.s32.totalorder %v754_v59, %v1943_v7  ;;  %v753_v8 = vshra.s32 %v721_v56, 5 }
  0x12   :  { %258 = vmatpush1.msra.mxu1 %v257_v33  ;;  %3041 = vst [vmem:[#allocation18_spill] sm:$0xff] %v1999_v61  ;;  %v2922_v9 = vand.u32 4294901760, %v1999_v61  ;;  %vm2026_vm9 = vcmp.eq.s32.totalorder %v769_v0, %v1943_v7  ;;  %v768_v25 = vshra.s32 %v736_v60, 5  ;;  %v720_v29 = vadd.s32 96, %v1977_v46 }
  0x13   :  { %409 = vmatprep.subr.mxu1 %v155_v11  ;;  %vm2037_vm10 = vcmp.eq.s32.totalorder %v753_v8, %v1943_v7  ;;  %v735_v44 = vadd.s32 216, %v1977_v46  ;;  %v719_v45 = vadd.s32 88, %v1977_v46  ;;  %v734_v50 = vadd.s32 208, %v1977_v46 }
  0x14   :  { %v817_v21 = vsel %vm2037_vm10, 1.0, %v2925_v6  ;;  %vm2066_vm11 = vcmp.eq.s32.totalorder %v768_v25, %v1943_v7  ;;  %v718_v55 = vadd.s32 80, %v1977_v46  ;;  %v733_v59 = vadd.s32 200, %v1977_v46 }
  0x15   :  { %v2054_v24 = vsub.f32 %v817_v21, %v817_v21  ;;  %v767_v52 = vshra.s32 %v735_v44, 5  ;;  %v751_v54 = vshra.s32 %v719_v45, 5  ;;  %v766_v57 = vshra.s32 %v734_v50, 5 }
  0x16   :  { %v717_v60 = vadd.s32 72, %v1977_v46  ;;  %v750_v8 = vshra.s32 %v718_v55, 5  ;;  %v3062_v44 = vmov 0  ;;  %v3064_v45 = vmov 0 }
  0x17   :  { %v2911_v32 = vand.u32 4294901760, %v2054_v24  ;;  %vm2115_vm13 = vcmp.eq.s32.totalorder %v767_v52, %v1943_v7  ;;  %vm2120_vm14 = vcmp.eq.s32.totalorder %v751_v54, %v1943_v7  ;;  %vm2134_vm15 = vcmp.eq.s32.totalorder %v766_v57, %v1943_v7 }
  0x18   :  { %vm2157_vm1 = vcmp.eq.s32.totalorder %v750_v8, %v1943_v7  ;;  %v732_v8 = vadd.s32 192, %v1977_v46  ;;  %v3195_v17 = vand.u32 4294901760, %v2009_v1 }
  0x7d   :  { %v95_v36 = vpop.permute.xlu0 %94 }
  0x7e   :  { %v104_v37 = vmax.f32 %v101_v35, %v95_v36  ;;  %v832_v36 = vsel %vm2066_vm11, 1.0, %v2925_v6 }
  0x80   :  { %v118_v38 = vsel %vm116_vm4, %v104_v37, 0  ;;  %v752_v37 = vshra.s32 %v720_v29, 5 }
  0x81   :  { %v196_v39 = vand.u32 4294901760, %v118_v38 }
  0x82   :  { %vm2082_vm12 = vcmp.eq.s32.totalorder %v752_v37, %v1943_v7 }
  0x83   :  { %v197_v40 = vsub.f32 %v118_v38, %v196_v39  ;;  %293 = vmatmul.mubr.f32.vlgmr.msra.gmra.mxu1 %v196_v39  ;;  %v816_v49 = vsel %vm2082_vm12, 1.0, %v2925_v6 }
  0x84   :  { %411 = vmatpush1.msra.mxu1 %v157_v12  ;;  %448 = vmatprep.mubr.f32.mxu1 %v2925_v6  ;;  %v2099_v51 = vsub.f32 %v816_v49, %v816_v49 }
  0x85   :  { %413 = vmatprep.subr.mxu1 %v159_v10  ;;  %v198_v41 = vand.u32 4294901760, %v197_v40 }
  0x86   :  { %415 = vmatpush1.msra.mxu1 %v161_v13  ;;  %v2909_v62 = vand.u32 4294901760, %v2099_v51 }
  0x87   :  { %452 = vmatmul.mubr.f32.vlgmr.msra.gmra.mxu1 %v198_v41  ;;  %571 = vmatprep.subr.mxu1 %v155_v11  ;;  %v199_v42 = vsub.f32 %v197_v40, %v198_v41  ;;  %v818_v11 = vsel %vm2015_vm8, 1.0, %v2925_v6 }
  0x88   :  { %573 = vmatpush1.msra.mxu1 %v157_v12  ;;  %610 = vmatprep.mubr.f32.mxu1 %v2925_v6  ;;  %v2031_v14 = vsub.f32 %v818_v11, %v818_v11  ;;  %v3193_v12 = vld [vmem:[#allocation18_spill] sm:$0xff] }
  0x89   :  { %575 = vmatprep.subr.mxu1 %v159_v10  ;;  %v200_v43 = vand.u32 4294901760, %v199_v42  ;;  %v2020_v10 = vsub.f32 %v834_v4, %v834_v4 }
  0x8a   :  { %577 = vmatpush1.msra.mxu1 %v161_v13  ;;  %v2921_v13 = vand.u32 4294901760, %v2009_v1  ;;  %v3197_v42 = vand.u32 4294901760, %v2031_v14 }
  0x8b   :  { %201 = vmatmul.mubr.f32.vlgmr.msra.gmra.mxu0 %v200_v43  ;;  %612 = vmatmul.mubr.f32.vlgmr.msra.gmra.mxu1 %v196_v39  ;;  %v2923_v43 = vmov 1.0   ;;  %v3196_v33 = vand.u32 4294901760, %v2020_v10 }
  0x8c   :  { %332 = vmatpush1.msra.mxu0 %v242_v18  ;;  %371 = vmatprep.mubr.f32.mxu0 %v2925_v6  ;;  %v1017_v18 = vsub.f32 %v1999_v61, %v2922_v9 }
  0x8d   :  { %335 = vmatprep.subr.mxu0 %v1955_v16  ;;  %v833_v16 = vsel %vm2026_vm9, 1.0, %v2925_v6 }
  0x8e   :  { %338 = vmatpush1.msra.mxu0 %v254_v19  ;;  %v2920_v19 = vand.u32 4294901760, %v2020_v10 }
  0x8f   :  { %489 = vmatprep.subr.mxu0 %v237_v22  ;;  %374 = vmatmul.mubr.f32.vlgmr.msra.gmra.mxu0 %v197_v40  ;;  %v921_v22 = vsub.f32 %v2009_v1, %v2921_v13  ;;  %v2079_v40 = vsub.f32 %v832_v36, %v832_v36  ;;  %v711_v13 = vadd.s32 24, %v1977_v46 }
  0x90   :  { %493 = vmatpush1.msra.mxu0 %v243_v23  ;;  %534 = vmatprep.mubr.f32.mxu0 %v2925_v6  ;;  %v2919_v23 = vand.u32 4294901760, %v2031_v14  ;;  %v1023_v27 = vsub.f32 %v2020_v10, %v2920_v19 }
  0x91   :  { %497 = vmatprep.subr.mxu0 %v249_v20  ;;  %v2045_v20 = vsub.f32 %v833_v16, %v833_v16  ;;  %v922_v30 = vand.u32 4294901760, %v921_v22  ;;  %v2910_v48 = vand.u32 4294901760, %v2079_v40  ;;  %v831_v16 = vsel %vm2115_vm13, 1.0, %v2925_v6 }
  0x92   :  { %501 = vmatpush1.msra.mxu0 %v255_v26  ;;  %v1018_v26 = vand.u32 4294901760, %v1017_v18  ;;  %v927_v31 = vsub.f32 %v2031_v14, %v2919_v23  ;;  %v1024_v34 = vand.u32 4294901760, %v1023_v27  ;;  %v815_v18 = vsel %vm2120_vm14, 1.0, %v2925_v6 }
  0x93   :  { %536 = vmatmul.mubr.f32.vlgmr.msra.gmra.mxu0 %v196_v39  ;;  %v2918_v28 = vand.u32 4294901760, %v2045_v20  ;;  %v933_v39 = vsub.f32 %v2054_v24, %v2911_v32  ;;  %1643 = vmatprep.subr.msk.mxu0 %vm1984_vm5, %v2923_v43  ;;  %v1035_v56 = vsub.f32 %v2079_v40, %v2910_v48  ;;  %v939_v22 = vsub.f32 %v2099_v51, %v2909_v62 }
  0x94   :  { %1678 = vmatprep.subr.mxu1 %v1018_v26  ;;  %v928_v38 = vand.u32 4294901760, %v927_v31  ;;  %1644 = vmatpush3.msk.msra.mxu0 %vm1994_vm6, %v2923_v43  ;;  %v2144_v25 = vsub.f32 %v831_v16, %v831_v16  ;;  %v2146_v26 = vsub.f32 %v815_v18, %v815_v18  ;;  %v830_v27 = vsel %vm2134_vm15, 1.0, %v2925_v6 }
  0x95   :  { %v1029_v35 = vsub.f32 %v2045_v20, %v2918_v28  ;;  %1679 = vmatpush3.msra.mxu1 %v922_v30  ;;  %v934_v47 = vand.u32 4294901760, %v933_v39  ;;  %1645 = vmatprep.subr.msk.mxu0 %vm2005_vm7, %v2923_v43  ;;  %v1036_v11 = vand.u32 4294901760, %v1035_v56  ;;  %v2154_v29 = vsub.f32 %v830_v27, %v830_v27 }
  0x96   :  { %1680 = vmatprep.subr.mxu1 %v1024_v34  ;;  %1646 = vmatpush3.msk.msra.mxu0 %vm2015_vm8, %v2923_v43  ;;  %v765_v31 = vshra.s32 %v733_v59, 5  ;;  %v749_v34 = vshra.s32 %v717_v60, 5  ;;  %v2907_v36 = vand.u32 4294901760, %v2144_v25  ;;  %v2905_v37 = vand.u32 4294901760, %v2146_v26 }
  0x97   :  { %v1030_v41 = vand.u32 4294901760, %v1029_v35  ;;  %1681 = vmatpush3.msra.mxu1 %v928_v38  ;;  %1647 = vmatprep.subr.msk.mxu0 %vm2026_vm9, %v2923_v43  ;;  %v940_v35 = vand.u32 4294901760, %v939_v22  ;;  %v814_v38 = vsel %vm2157_vm1, 1.0, %v2925_v6  ;;  %v2902_v39 = vand.u32 4294901760, %v2154_v29 }
  0x98   :  { %1648 = vmatpush3.msk.msra.mxu0 %vm2037_vm10, %v2923_v43  ;;  %vm2176_vm2 = vcmp.eq.s32.totalorder %v765_v31, %v1943_v7  ;;  %vm2181_vm3 = vcmp.eq.s32.totalorder %v749_v34, %v1943_v7  ;;  %v945_v49 = vsub.f32 %v2146_v26, %v2905_v37  ;;  %v764_v31 = vshra.s32 %v732_v8, 5 }
  0x99   :  { %1682 = vmatprep.subr.mxu1 %v1030_v41  ;;  %1649 = vmatprep.subr.msk.mxu0 %vm2066_vm11, %v2923_v43  ;;  %v2173_v41 = vsub.f32 %v814_v38, %v814_v38  ;;  %v3063_v44 = vsel %vm2176_vm2, 4294967295, %v3062_v44  ;;  %v3065_v45 = vsel %vm2181_vm3, 4294967295, %v3064_v45  ;;  %v829_v50 = vsel %vm2176_vm2, 1.0, %v2925_v6 }
  0x9a   :  { %1683 = vmatpush3.msra.mxu1 %v934_v47  ;;  %1650 = vmatpush3.msk.msra.mxu0 %vm2082_vm12, %v2923_v43  ;;  %v1041_v47 = vsub.f32 %v2144_v25, %v2907_v36  ;;  %v813_v52 = vsel %vm2181_vm3, 1.0, %v2925_v6  ;;  %v1047_v54 = vsub.f32 %v2154_v29, %v2902_v39  ;;  %v2207_v56 = vsub.f32 %v829_v50, %v829_v50 }
  0x9b   :  { %1684 = vmatprep.subr.mxu1 %v1036_v11  ;;  %1651 = vmatprep.subr.msk.mxu0 %vm2115_vm13, %v2923_v43  ;;  %v2901_v55 = vand.u32 4294901760, %v2173_v41  ;;  %v2209_v57 = vsub.f32 %v813_v52, %v813_v52  ;;  %v946_v60 = vand.u32 4294901760, %v945_v49  ;;  %v716_v11 = vadd.s32 64, %v1977_v46 }
  0x9c   :  { %1652 = vmatpush3.msk.msra.mxu0 %vm2120_vm14, %v2923_v43  ;;  %1685 = vmatpush3.msra.mxu1 %v940_v35  ;;  %3066 = vst [vmem:[#allocation19_spill] sm:$0xff] %v2207_v56  ;;  %v1042_v59 = vand.u32 4294901760, %v1041_v47  ;;  %v1048_v16 = vand.u32 4294901760, %v1047_v54  ;;  %v2900_v22 = vand.u32 4294901760, %v2207_v56  ;;  %v731_v35 = vadd.s32 184, %v1977_v46 }
  0x9d   :  { %1653 = vmatprep.subr.msk.mxu0 %vm2134_vm15, %v2923_v43  ;;  %3067 = vst [vmem:[#allocation20_spill] sm:$0xff] %v2209_v57  ;;  %v951_v18 = vsub.f32 %v2173_v41, %v2901_v55  ;;  %v2893_v27 = vand.u32 4294901760, %v2209_v57  ;;  %v748_v34 = vshra.s32 %v716_v11, 5  ;;  %v715_v38 = vadd.s32 56, %v1977_v46 }
  0x9e   :  { %1654 = vmatpush3.msk.msra.mxu0 %vm2157_vm1, %v2923_v43  ;;  %1686 = vmatprep.subr.mxu1 %v1042_v59  ;;  %v1053_v49 = vsub.f32 %v2207_v56, %v2900_v22  ;;  %v730_v52 = vadd.s32 176, %v1977_v46  ;;  %vm2237_vm4 = vcmp.eq.s32.totalorder %v764_v31, %v1943_v7  ;;  %v3068_v54 = vmov 0 }
  0x9f   :  { %1655 = vmatprep.subr.msk.mxu0 %vm2176_vm2, %v2923_v43  ;;  %1687 = vmatpush3.msra.mxu1 %v946_v60  ;;  %v952_v47 = vand.u32 4294901760, %v951_v18  ;;  %v957_v50 = vsub.f32 %v2209_v57, %v2893_v27  ;;  %v3069_v54 = vsel %vm2237_vm4, 4294967295, %v3068_v54  ;;  %vm2242_vm0 = vcmp.eq.s32.totalorder %v748_v34, %v1943_v7 }
  0xa0   :  { %1656 = vmatpush3.msk.msra.mxu0 %vm2181_vm3, %v2923_v43  ;;  %1688 = vmatprep.subr.mxu1 %v1048_v16  ;;  %v3070_v59 = vmov 0  ;;  %v763_v60 = vshra.s32 %v731_v35, 5  ;;  %v747_v8 = vshra.s32 %v715_v38, 5  ;;  %v1054_v11 = vand.u32 4294901760, %v1053_v49 }
  0xa1   :  { %v3071_v59 = vsel %vm2242_vm0, 4294967295, %v3070_v59  ;;  %1689 = vmatpush3.msra.mxu1 %v952_v47  ;;  %v958_v18 = vand.u32 4294901760, %v957_v50  ;;  %v828_v27 = vsel %vm2237_vm4, 1.0, %v2925_v6  ;;  %v812_v16 = vsel %vm2242_vm0, 1.0, %v2925_v6  ;;  %1657 = vmatprep.subr.msk.mxu0 %vm2237_vm4, %v2923_v43 }
  0xa2   :  { %v2255_v31 = vsub.f32 %v828_v27, %v828_v27  ;;  %v2257_v34 = vsub.f32 %v812_v16, %v812_v16  ;;  %vm2260_vm3 = vcmp.eq.s32.totalorder %v763_v60, %v1943_v7  ;;  %v3074_v35 = vmov 0  ;;  %1658 = vmatpush3.msk.msra.mxu0 %vm2242_vm0, %v2923_v43  ;;  %1690 = vmatprep.subr.mxu1 %v1054_v11 }
  0xa3   :  { %v3075_v35 = vsel %vm2260_vm3, 4294967295, %v3074_v35  ;;  %vm2265_vm2 = vcmp.eq.s32.totalorder %v747_v8, %v1943_v7  ;;  %v3076_v38 = vmov 0  ;;  %v827_v27 = vsel %vm2260_vm3, 1.0, %v2925_v6  ;;  %1659 = vmatprep.subr.msk.mxu0 %vm2260_vm3, %v2923_v43  ;;  %1691 = vmatpush3.msra.mxu1 %v958_v18 }
  0xa4   :  { %3072 = vst [vmem:[#allocation21_spill] sm:$0xff] %v2255_v31  ;;  %3073 = vst [vmem:[#allocation22_spill] sm:$0xff] %v2257_v34  ;;  %v3077_v38 = vsel %vm2265_vm2, 4294967295, %v3076_v38  ;;  %v811_v47 = vsel %vm2265_vm2, 1.0, %v2925_v6  ;;  %v762_v49 = vshra.s32 %v730_v52, 5  ;;  %v714_v50 = vadd.s32 48, %v1977_v46  ;;  %1660 = vmatpush3.msk.msra.mxu0 %vm2265_vm2, %v2923_v43 }
  0xa5   :  { %v2906_v60 = vand.u32 4294901760, %v2255_v31  ;;  %v2908_v8 = vand.u32 4294901760, %v2257_v34  ;;  %v2284_v11 = vsub.f32 %v827_v27, %v827_v27  ;;  %v2286_v16 = vsub.f32 %v811_v47, %v811_v47 }
  0xa6   :  { %vm2292_vm0 = vcmp.eq.s32.totalorder %v762_v49, %v1943_v7  ;;  %v3080_v52 = vmov 0  ;;  %v746_v22 = vshra.s32 %v714_v50, 5  ;;  %v729_v18 = vadd.s32 168, %v1977_v46 }
  0xa7   :  { %3078 = vst [vmem:[#allocation23_spill] sm:$0xff] %v2284_v11  ;;  %3079 = vst [vmem:[#allocation24_spill] sm:$0xff] %v2286_v16  ;;  %v3081_v52 = vsel %vm2292_vm0, 4294967295, %v3080_v52  ;;  %v713_v55 = vadd.s32 40, %v1977_v46  ;;  %v1059_v27 = vsub.f32 %v2255_v31, %v2906_v60  ;;  %v963_v47 = vsub.f32 %v2257_v34, %v2908_v8  ;;  %1661 = vmatprep.subr.msk.mxu0 %vm2292_vm0, %v2923_v43 }
  0xa8   :  { %v2917_v39 = vand.u32 4294901760, %v2284_v11  ;;  %v2916_v49 = vand.u32 4294901760, %v2286_v16  ;;  %v826_v50 = vsel %vm2292_vm0, 1.0, %v2925_v6  ;;  %vm2313_vm2 = vcmp.eq.s32.totalorder %v746_v22, %v1943_v7 }
  0xa9   :  { %v3082_v37 = vmov 0  ;;  %v761_v60 = vshra.s32 %v729_v18, 5  ;;  %v745_v36 = vshra.s32 %v713_v55, 5  ;;  %v1060_v8 = vand.u32 4294901760, %v1059_v27  ;;  %1662 = vmatpush3.msk.msra.mxu0 %vm2313_vm2, %v2923_v43 }
  0xaa   :  { %v3083_v37 = vsel %vm2313_vm2, 4294967295, %v3082_v37  ;;  %v964_v62 = vand.u32 4294901760, %v963_v47  ;;  %v1065_v48 = vsub.f32 %v2284_v11, %v2917_v39  ;;  %v969_v32 = vsub.f32 %v2286_v16, %v2916_v49 }
  0xab   :  { %v2326_v22 = vsub.f32 %v826_v50, %v826_v50  ;;  %v810_v55 = vsel %vm2313_vm2, 1.0, %v2925_v6  ;;  %vm2332_vm0 = vcmp.eq.s32.totalorder %v761_v60, %v1943_v7  ;;  %v3085_v18 = vmov 0  ;;  %1692 = vmatprep.subr.mxu1 %v1060_v8 }
  0xac   :  { %v3086_v18 = vsel %vm2332_vm0, 4294967295, %v3085_v18  ;;  %vm2337_vm3 = vcmp.eq.s32.totalorder %v745_v36, %v1943_v7  ;;  %v3088_v27 = vmov 0  ;;  %v1066_v47 = vand.u32 4294901760, %v1065_v48  ;;  %1663 = vmatprep.subr.msk.mxu0 %vm2332_vm0, %v2923_v43  ;;  %1693 = vmatpush3.msra.mxu1 %v964_v62 }
  0xad   :  { %3084 = vst [vmem:[#allocation25_spill] sm:$0xff] %v2326_v22  ;;  %3087 = vst [vmem:[#allocation26_spill] sm:$0xff] %v3086_v18  ;;  %v3089_v27 = vsel %vm2337_vm3, 4294967295, %v3088_v27  ;;  %v970_v49 = vand.u32 4294901760, %v969_v32  ;;  %v2341_v39 = vsub.f32 %v810_v55, %v810_v55  ;;  %v825_v50 = vsel %vm2332_vm0, 1.0, %v2925_v6  ;;  %1664 = vmatpush3.msk.msra.mxu0 %vm2337_vm3, %v2923_v43 }
  0xae   :  { %3090 = vst [vmem:[#allocation27_spill] sm:$0xff] %v3089_v27  ;;  %v2929_v60 = vand.u32 4294901760, %v2326_v22  ;;  %v2350_v36 = vsub.f32 %v825_v50, %v825_v50  ;;  %v809_v48 = vsel %vm2337_vm3, 1.0, %v2925_v6  ;;  %v728_v32 = vadd.s32 160, %v1977_v46  ;;  %1694 = vmatprep.subr.mxu1 %v1066_v47 }
  0xaf   :  { %3091 = vst [vmem:[#allocation28_spill] sm:$0xff] %v2341_v39  ;;  %v2932_v8 = vand.u32 4294901760, %v2341_v39  ;;  %v2360_v55 = vsub.f32 %v809_v48, %v809_v48  ;;  %v712_v62 = vadd.s32 32, %v1977_v46  ;;  %v727_v50 = vadd.s32 152, %v1977_v46  ;;  %1695 = vmatpush3.msra.mxu1 %v970_v49 }
  0xb0   :  { %3092 = vst [vmem:[#allocation29_spill] sm:$0xff] %v2350_v36  ;;  %v1071_v28 = vsub.f32 %v2326_v22, %v2929_v60  ;;  %v2940_v23 = vand.u32 4294901760, %v2350_v36  ;;  %v760_v19 = vshra.s32 %v728_v32, 5  ;;  %v3094_v60 = vmov 0 }
  0xb1   :  { %3093 = vst [vmem:[#allocation30_spill] sm:$0xff] %v2360_v55  ;;  %v975_v47 = vsub.f32 %v2341_v39, %v2932_v8  ;;  %v2939_v48 = vand.u32 4294901760, %v2360_v55  ;;  %v744_v9 = vshra.s32 %v712_v62, 5  ;;  %v759_v43 = vshra.s32 %v727_v50, 5 }
  0xb2   :  { %v1072_v6 = vand.u32 4294901760, %v1071_v28  ;;  %v1077_v49 = vsub.f32 %v2350_v36, %v2940_v23  ;;  %vm2377_vm3 = vcmp.eq.s32.totalorder %v760_v19, %v1943_v7  ;;  %v743_v32 = vshra.s32 %v711_v13, 5 }
  0xb3   :  { %v3095_v60 = vsel %vm2377_vm3, 4294967295, %v3094_v60  ;;  %v976_v22 = vand.u32 4294901760, %v975_v47  ;;  %v981_v8 = vsub.f32 %v2360_v55, %v2939_v48  ;;  %v3097_v39 = vmov 0.0  }
  0xb4   :  { %3096 = vst [vmem:[#allocation31_spill] sm:$0xff] %v3095_v60  ;;  %v824_v62 = vsel %vm2377_vm3, 1.0, %v3097_v39  ;;  %vm2388_vm0 = vcmp.eq.s32.totalorder %v744_v9, %v1943_v7  ;;  %v3098_v28 = vmov 0  ;;  %v3101_v50 = vmov 1.0   ;;  %1696 = vmatprep.subr.mxu1 %v1072_v6 }
  0xb5   :  { %v3099_v28 = vsel %vm2388_vm0, 4294967295, %v3098_v28  ;;  %1665 = vmatprep.subr.msk.mxu0 %vm2377_vm3, %v3101_v50  ;;  %v1078_v13 = vand.u32 4294901760, %v1077_v49  ;;  %v2395_v19 = vsub.f32 %v824_v62, %v824_v62  ;;  %v808_v47 = vsel %vm2388_vm0, 1.0, %v3097_v39  ;;  %1697 = vmatpush3.msra.mxu1 %v976_v22 }
  0xb6   :  { %3100 = vst [vmem:[#allocation32_spill] sm:$0xff] %v3099_v28  ;;  %vm2401_vm2 = vcmp.eq.s32.totalorder %v759_v43, %v1943_v7  ;;  %v3103_v48 = vmov 0  ;;  %1666 = vmatpush3.msk.msra.mxu0 %vm2388_vm0, %v3101_v50  ;;  %v982_v9 = vand.u32 4294901760, %v981_v8  ;;  %v2408_v23 = vsub.f32 %v808_v47, %v808_v47 }
  0xb7   :  { %3102 = vst [vmem:[#allocation33_spill] sm:$0xff] %v2395_v19  ;;  %v3104_v48 = vsel %vm2401_vm2, 4294967295, %v3103_v48  ;;  %v823_v6 = vsel %vm2401_vm2, 1.0, %v3097_v39  ;;  %vm2414_vm3 = vcmp.eq.s32.totalorder %v743_v32, %v1943_v7  ;;  %v3107_v49 = vmov 0  ;;  %1667 = vmatprep.subr.msk.mxu0 %vm2401_vm2, %v3101_v50  ;;  %1698 = vmatprep.subr.mxu1 %v1078_v13 }
  0xb8   :  { %3105 = vst [vmem:[#allocation34_spill] sm:$0xff] %v3104_v48  ;;  %3106 = vst [vmem:[#allocation35_spill] sm:$0xff] %v2408_v23  ;;  %v3108_v49 = vsel %vm2414_vm3, 4294967295, %v3107_v49  ;;  %v2961_v43 = vand.u32 4294901760, %v2395_v19  ;;  %v2422_v22 = vsub.f32 %v823_v6, %v823_v6  ;;  %v807_v8 = vsel %vm2414_vm3, 1.0, %v3097_v39  ;;  %1668 = vmatpush3.msk.msra.mxu0 %vm2414_vm3, %v3101_v50  ;;  %1699 = vmatpush3.msra.mxu1 %v982_v9 }
  0xb9   :  { %3109 = vst [vmem:[#allocation36_spill] sm:$0xff] %v3108_v49  ;;  %v726_v62 = vadd.s32 144, %v1977_v46  ;;  %v2964_v32 = vand.u32 4294901760, %v2408_v23  ;;  %v2432_v47 = vsub.f32 %v807_v8, %v807_v8  ;;  %v710_v13 = vadd.s32 16, %v1977_v46 }
  0xba   :  { %3110 = vst [vmem:[#allocation37_spill] sm:$0xff] %v2422_v22  ;;  %v725_v6 = vadd.s32 136, %v1977_v46  ;;  %v1083_v55 = vsub.f32 %v2395_v19, %v2961_v43  ;;  %v2972_v36 = vand.u32 4294901760, %v2422_v22  ;;  %v709_v48 = vadd.s32 8, %v1977_v46 }
  0xbb   :  { %3111 = vst [vmem:[#allocation38_spill] sm:$0xff] %v2432_v47  ;;  %v758_v16 = vshra.s32 %v726_v62, 5  ;;  %v987_v9 = vsub.f32 %v2408_v23, %v2964_v32  ;;  %v2969_v8 = vand.u32 4294901760, %v2432_v47  ;;  %v742_v49 = vshra.s32 %v710_v13, 5 }
  0xbc   :  { %v757_v11 = vshra.s32 %v725_v6, 5  ;;  %v1084_v28 = vand.u32 4294901760, %v1083_v55  ;;  %v1089_v34 = vsub.f32 %v2422_v22, %v2972_v36  ;;  %v3112_v43 = vmov 0 }
  0xbd   :  { %vm2449_vm3 = vcmp.eq.s32.totalorder %v758_v16, %v1943_v7  ;;  %v741_v62 = vshra.s32 %v709_v48, 5  ;;  %v988_v19 = vand.u32 4294901760, %v987_v9  ;;  %v993_v32 = vsub.f32 %v2432_v47, %v2969_v8 }
  0xbe   :  { %v3113_v43 = vsel %vm2449_vm3, 4294967295, %v3112_v43  ;;  %v822_v13 = vsel %vm2449_vm3, 1.0, %v3097_v39  ;;  %vm2460_vm2 = vcmp.eq.s32.totalorder %v742_v49, %v1943_v7  ;;  %v3115_v55 = vmov 0  ;;  %1669 = vmatprep.subr.msk.mxu0 %vm2449_vm3, %v3101_v50  ;;  %1700 = vmatprep.subr.mxu1 %v1084_v28 }
  0xbf   :  { %3114 = vst [vmem:[#allocation39_spill] sm:$0xff] %v3113_v43  ;;  %v3116_v55 = vsel %vm2460_vm2, 4294967295, %v3115_v55  ;;  %v1090_v16 = vand.u32 4294901760, %v1089_v34  ;;  %v2467_v48 = vsub.f32 %v822_v13, %v822_v13  ;;  %v806_v6 = vsel %vm2460_vm2, 1.0, %v3097_v39  ;;  %1670 = vmatpush3.msk.msra.mxu0 %vm2460_vm2, %v3101_v50  ;;  %1701 = vmatpush3.msra.mxu1 %v988_v19 }
  0xc0   :  { %3117 = vst [vmem:[#allocation40_spill] sm:$0xff] %v3116_v55  ;;  %vm2473_vm0 = vcmp.eq.s32.totalorder %v757_v11, %v1943_v7  ;;  %v3119_v9 = vmov 0  ;;  %v994_v49 = vand.u32 4294901760, %v993_v32  ;;  %v2480_v8 = vsub.f32 %v806_v6, %v806_v6 }
  0xc1   :  { %3118 = vst [vmem:[#allocation41_spill] sm:$0xff] %v2467_v48  ;;  %v3120_v9 = vsel %vm2473_vm0, 4294967295, %v3119_v9  ;;  %v821_v34 = vsel %vm2473_vm0, 1.0, %v3097_v39  ;;  %vm2486_vm3 = vcmp.eq.s32.totalorder %v741_v62, %v1943_v7  ;;  %v3123_v28 = vmov 0  ;;  %1671 = vmatprep.subr.msk.mxu0 %vm2473_vm0, %v3101_v50  ;;  %1702 = vmatprep.subr.mxu1 %v1090_v16 }
  0xc2   :  { %3121 = vst [vmem:[#allocation42_spill] sm:$0xff] %v3120_v9  ;;  %3122 = vst [vmem:[#allocation43_spill] sm:$0xff] %v2480_v8  ;;  %v3124_v28 = vsel %vm2486_vm3, 4294967295, %v3123_v28  ;;  %v2985_v11 = vand.u32 4294901760, %v2467_v48  ;;  %v2494_v19 = vsub.f32 %v821_v34, %v821_v34  ;;  %v805_v32 = vsel %vm2486_vm3, 1.0, %v3097_v39  ;;  %1672 = vmatpush3.msk.msra.mxu0 %vm2486_vm3, %v3101_v50  ;;  %1703 = vmatpush3.msra.mxu1 %v994_v49 }
  0xc3   :  { %3125 = vst [vmem:[#allocation44_spill] sm:$0xff] %v3124_v28  ;;  %v724_v13 = vadd.s32 128, %v1977_v46  ;;  %v2986_v62 = vand.u32 4294901760, %v2480_v8  ;;  %v2504_v6 = vsub.f32 %v805_v32, %v805_v32  ;;  %v740_v16 = vshra.s32 %v1977_v46, 5 }
  0xc4   :  { %3126 = vst [vmem:[#allocation45_spill] sm:$0xff] %v2494_v19  ;;  %v1095_v34 = vsub.f32 %v2467_v48, %v2985_v11  ;;  %v2989_v36 = vand.u32 4294901760, %v2494_v19  ;;  %v3128_v49 = vmov 0  ;;  %v3131_v11 = vmov 0  ;;  %v113_v48 = vld [vmem:[#allocation14 + $0x18] sm:$0xf] }
  0xc5   :  { %3127 = vst [vmem:[#allocation46_spill] sm:$0xff] %v2504_v6  ;;  %v756_v47 = vshra.s32 %v724_v13, 5  ;;  %v999_v22 = vsub.f32 %v2480_v8, %v2986_v62  ;;  %v2990_v23 = vand.u32 4294901760, %v2504_v6  ;;  %vm2516_vm3 = vcmp.eq.s32.totalorder %v740_v16, %v1943_v7 }
  0xc6   :  { %v3129_v49 = vsel %vm2516_vm3, 4294967295, %v3128_v49  ;;  %v1096_v32 = vand.u32 4294901760, %v1095_v34  ;;  %v1101_v28 = vsub.f32 %v2494_v19, %v2989_v36  ;;  %v804_v13 = vsel %vm2516_vm3, 1.0, %v3097_v39 }
  0xc7   :  { %3130 = vst [vmem:[#allocation47_spill] sm:$0xff] %v3129_v49  ;;  %vm2524_vm0 = vcmp.eq.s32.totalorder %v756_v47, %v1943_v7  ;;  %v1000_v62 = vand.u32 4294901760, %v999_v22  ;;  %v1005_v16 = vsub.f32 %v2504_v6, %v2990_v23  ;;  %v2537_v8 = vsub.f32 %v804_v13, %v804_v13 }
  0xc8   :  { %v3132_v11 = vsel %vm2524_vm0, 4294967295, %v3131_v11  ;;  %v820_v34 = vsel %vm2524_vm0, 1.0, %v3097_v39  ;;  %1673 = vmatprep.subr.msk.mxu0 %vm2524_vm0, %v3101_v50  ;;  %1704 = vmatprep.subr.mxu1 %v1096_v32  ;;  %v1102_v47 = vand.u32 4294901760, %v1101_v28  ;;  %v654_v55 = vrot.slane %v1927_v2, 4 }
  0xc9   :  { %3133 = vst [vmem:[#allocation48_spill] sm:$0xff] %v3132_v11  ;;  %3134 = vst [vmem:[#allocation49_spill] sm:$0xff] %v2537_v8  ;;  %v2542_v36 = vsub.f32 %v820_v34, %v820_v34  ;;  %1674 = vmatpush3.msk.msra.mxu0 %vm2516_vm3, %v3101_v50  ;;  %1705 = vmatpush3.msra.mxu1 %v1000_v62  ;;  %v1006_v22 = vand.u32 4294901760, %v1005_v16  ;;  %v2998_v23 = vand.u32 4294901760, %v2537_v8  ;;  %v3211_v0 = vand.u32 4294901760, %v2173_v41 }
  0xca   :  { %1713 = vmatprep.subr.mxu0 %v1999_v61  ;;  %1706 = vmatprep.subr.mxu1 %v1102_v47 }
  0xcb   :  { %3135 = vst [vmem:[#allocation50_spill] sm:$0xff] %v2542_v36  ;;  %v3005_v13 = vand.u32 4294901760, %v2542_v36  ;;  %1707 = vmatpush3.msra.mxu1 %v1006_v22  ;;  %v1011_v28 = vsub.f32 %v2537_v8, %v2998_v23 }
  0xcc   :  { %v3190_v58 = vld [vmem:[#allocation46_spill] sm:$0xff] }
  0xcd   :  { %v1107_v32 = vsub.f32 %v2542_v36, %v3005_v13  ;;  %v1012_v34 = vand.u32 4294901760, %v1011_v28  ;;  %v114_v13 = vld [vmem:[#allocation14 + $0x20] sm:$0xf] }
  0xce   :  { %v655_v43 = vrot.slane %v114_v13, 4 }
  0xcf   :  { %v1108_v6 = vand.u32 4294901760, %v1107_v32  ;;  %v652_v32 = vrot.slane %v113_v48, 4 }
  0xd0   :  { %v3192_v5 = vld [vmem:[#allocation49_spill] sm:$0xff] }
  0xd1   :  { %1708 = vmatprep.subr.mxu1 %v1108_v6  ;;  %v651_v6 = vrot.slane %v1932_v3, 4 }
  0xd2   :  { %1709 = vmatpush3.msra.mxu1 %v1012_v34  ;;  %v3191_v63 = vld [vmem:[#allocation50_spill] sm:$0xff] }
  0xd3   :  { %1748 = vmatprep.subr.msk.mxu1 %vm1984_vm5, %v3101_v50  ;;  %vm3136_vm5 = vcmask 1043456  }
  0xd4   :  { %vm3137_vm3 = vmmov %vm3136_vm5 }
  0xd5   :  { %vm3138_vm0 = vmmov %vm3137_vm3 }
 0x143   :  { %v294_v62 = vpop.f32.mrf.mxu1 }
 0x145   :  { %v296_v16 = vpop.f32.mrf.mxu1 }
 0x147   :  { %v453_v47 = vpop.f32.mrf.mxu1 }
 0x149   :  { %v455_v23 = vpop.f32.mrf.mxu1 }
 0x14b   :  { %v202_v22 = vpop.f32.mrf.mxu0  ;;  %v613_v53 = vpop.f32.mrf.mxu1 }
 0x14c   :  { %v295_v19 = vadd.f32 %v294_v62, %v202_v22  ;;  %v653_v62 = vsel %vm3136_vm5, %v651_v6, %v652_v32  ;;  %vm644_vm5 = vcmp.lt.s32.totalorder %v1953_v15, 224 }
 0x14d   :  { %v204_v61 = vpop.f32.mrf.mxu0 }
 0x14e   :  { %v297_v49 = vadd.f32 %v296_v16, %v204_v61 }
 0x14f   :  { %v375_v8 = vpop.f32.mrf.mxu0 }
 0x150   :  { %v376_v11 = vadd.f32 %v375_v8, %v295_v19  ;;  %v615_v8 = vpop.f32.mrf.mxu1  ;;  %v656_v19 = vsel %vm3137_vm3, %v654_v55, %v655_v43  ;;  %v1544_v43 = vsel %vm644_vm5, 1.0, %v3097_v39  ;;  %v618_v55 = vmul.f32 0.31622776, %v1932_v3 }
 0x151   :  { %v377_v28 = vpop.f32.mrf.mxu0 }
 0x152   :  { %v378_v34 = vadd.f32 %v377_v28, %v297_v49  ;;  %v454_v36 = vadd.f32 %v453_v47, %v376_v11 }
 0x153   :  { %v537_v9 = vpop.f32.mrf.mxu0 }
 0x154   :  { %v538_v60 = vadd.f32 %v537_v9, %v454_v36  ;;  %v456_v31 = vadd.f32 %v455_v23, %v378_v34  ;;  %v622_v34 = vmul.f32 %v618_v55, %v618_v55 }
 0x155   :  { %v539_v22 = vpop.f32.mrf.mxu0 }
 0x156   :  { %v614_v27 = vadd.f32 %v613_v53, %v538_v60  ;;  %v540_v61 = vadd.f32 %v539_v22, %v456_v31 }
 0x158   :  { %v659_v16 = vsub.f32 %v614_v27, %v653_v62  ;;  %v616_v57 = vadd.f32 %v615_v8, %v540_v61  ;;  %v619_v62 = vmul.f32 0.31622776, %v1927_v2 }
 0x15a   :  { %v661_v48 = vmul.f32 %v659_v16, %v659_v16  ;;  %v660_v49 = vsub.f32 %v616_v57, %v656_v19  ;;  %v623_v22 = vmul.f32 %v619_v62, %v619_v62  ;;  %v621_v8 = vmul.f32 %v616_v57, %v616_v57 }
 0x15b   :  { %v702_v62 = vand.u32 31, %v1953_v15 }
 0x15c   :  { %v663_v11 = vrot.slane %v661_v48, 4  ;;  %v662_v47 = vmul.f32 %v660_v49, %v660_v49  ;;  %v632_v19 = vsel %vm3138_vm0, %v623_v22, 0.0 }
 0x15d   :  { %v633_v49 = vadd.f32 %v632_v19, %v621_v8 }
 0x15e   :  { %v664_v28 = vadd.f32 %v663_v11, %v661_v48  ;;  %v669_v18 = vrot.slane %v662_v47, 4 }
 0x160   :  { %v665_v56 = vrot.slane %v664_v28, 2  ;;  %v670_v13 = vadd.f32 %v669_v18, %v662_v47  ;;  %v620_v18 = vmul.f32 %v614_v27, %v614_v27 }
 0x162   :  { %v666_v36 = vadd.f32 %v665_v56, %v664_v28  ;;  %v671_v23 = vrot.slane %v670_v13, 2  ;;  %v624_v56 = vsel %vm3137_vm3, %v622_v34, 0.0 }
 0x163   :  { %v625_v61 = vadd.f32 %v624_v56, %v620_v18 }
 0x164   :  { %v667_v9 = vrot.slane %v666_v36, 1  ;;  %v672_v53 = vadd.f32 %v671_v23, %v670_v13 }
 0x165   :  { %v626_v48 = vrot.slane %v625_v61, 4 }
 0x166   :  { %v668_v31 = vadd.f32 %v667_v9, %v666_v36  ;;  %v673_v60 = vrot.slane %v672_v53, 1  ;;  %v634_v36 = vrot.slane %v633_v49, 4 }
 0x167   :  { %v627_v2 = vadd.f32 %v626_v48, %v625_v61  ;;  %v704_v61 = vshra.s32 %v702_v62, 2  ;;  %v3154_v62 = vld [vmem:[#allocation31_spill] sm:$0xff] }
 0x168   :  { %1857 = vrsqrt.f32 %v668_v31  ;;  %v674_v6 = vadd.f32 %v673_v60, %v672_v53  ;;  %vm679_vm5 = vcmp.eq.f32.partialorder %v668_v31, inf  ;;  %v682_v3 = vand.u32 2147483648, %v668_v31 }
 0x169   :  { %vm681_vm2 = vcmp.eq.f32.partialorder %v668_v31, 0.0  ;;  %v628_v60 = vrot.slane %v627_v2, 2 }
 0x16a   :  { %v676_v32 = vmul.f32 %v1544_v43, %v674_v6  ;;  %v635_v43 = vadd.f32 %v634_v36, %v633_v49  ;;  %v701_v6 = vand.u32 31, %v1943_v7 }
 0x16b   :  { %v629_v34 = vadd.f32 %v628_v60, %v627_v2 }
 0x16c   :  { %1859 = vrsqrt.f32 %v676_v32  ;;  %vm686_vm3 = vcmp.eq.f32.partialorder %v676_v32, inf  ;;  %v689_v9 = vand.u32 2147483648, %v676_v32  ;;  %vm688_vm4 = vcmp.eq.f32.partialorder %v676_v32, 0.0 }
 0x16d   :  { %v703_v18 = vshra.s32 %v701_v6, 2  ;;  %v630_v56 = vrot.slane %v629_v34, 1  ;;  %v3150_v6 = vld [vmem:[#allocation20_spill] sm:$0xff] }
 0x16e   :  { %v3215_v21 = vand.u32 4294901760, %v3150_v6 }
 0x16f   :  { %vm705_vm0 = vcmp.eq.s32.totalorder %v703_v18, %v1977_v46  ;;  %v3156_v18 = vld [vmem:[#allocation22_spill] sm:$0xff] }
 0x170   :  { %v707_v48 = vsel %vm705_vm0, 0.25, %v3097_v39  ;;  %vm3142_vm0 = vnez %v3071_v59 }
 0x175   :  { %v1858_v16 = vpop.eup %1857 }
 0x176   :  { %v678_v11 = vmul.f32 %v1858_v16, %v668_v31 }
 0x178   :  { %v680_v47 = vsel %vm679_vm5, %v668_v31, %v678_v11  ;;  %v636_v31 = vrot.slane %v635_v43, 2  ;;  %vm3140_vm5 = vnez %v3065_v45 }
 0x179   :  { %v1860_v28 = vpop.eup %1859  ;;  %v683_v13 = vsel %vm681_vm2, %v682_v3, %v680_v47  ;;  %vm706_vm2 = vcmp.eq.s32.totalorder %v704_v61, %v1977_v46  ;;  %v3160_v61 = vld [vmem:[#allocation34_spill] sm:$0xff] }
 0x17a   :  { %v685_v27 = vmul.f32 %v1860_v28, %v676_v32  ;;  %v691_v23 = vmul.f32 1.442695, %v683_v13  ;;  %v637_v22 = vadd.f32 %v636_v31, %v635_v43  ;;  %v708_v15 = vsel %vm706_vm2, 0.25, %v3097_v39  ;;  %v3147_v43 = vld [vmem:[#allocation19_spill] sm:$0xff]  ;;  %v3153_v31 = vld [vmem:[#allocation21_spill] sm:$0xff] }
 0x17b   :  { %vm3143_vm2 = vnez %v3075_v35  ;;  %v3213_v4 = vand.u32 4294901760, %v3147_v43 }
 0x17c   :  { %v687_v53 = vsel %vm686_vm3, %v676_v32, %v685_v27  ;;  %1861 = vpow2.f32 %v691_v23  ;;  %v631_v32 = vadd.f32 %v630_v56, %v629_v34  ;;  %v638_v19 = vrot.slane %v637_v22, 1  ;;  %v3151_v34 = vld [vmem:[#allocation27_spill] sm:$0xff]  ;;  %v3157_v56 = vld [vmem:[#allocation32_spill] sm:$0xff] }
 0x17d   :  { %v690_v57 = vsel %vm688_vm4, %v689_v9, %v687_v53  ;;  %vm3139_vm4 = vnez %v3063_v44  ;;  %vm3141_vm3 = vnez %v3069_v54 }
 0x17e   :  { %v693_v55 = vmul.f32 1.442695, %v690_v57  ;;  %v639_v11 = vadd.f32 %v638_v19, %v637_v22  ;;  %v3159_v22 = vld [vmem:[#allocation23_spill] sm:$0xff]  ;;  %v3165_v19 = vld [vmem:[#allocation25_spill] sm:$0xff] }
 0x180   :  { %1863 = vpow2.f32 %v693_v55  ;;  %v3148_v55 = vld [vmem:[#allocation26_spill] sm:$0xff] }
 0x189   :  { %v1862_v8 = vpop.eup %1861 }
 0x18a   :  { %v1545_v16 = vadd.f32 -1.0, %v1862_v8  ;;  %v3162_v8 = vld [vmem:[#allocation24_spill] sm:$0xff] }
 0x18b   :  { %v3223_v30 = vand.u32 4294901760, %v3162_v8 }
 0x18c   :  { %v697_v49 = vadd.f32 %v1545_v16, %v631_v32  ;;  %v3163_v32 = vld [vmem:[#allocation36_spill] sm:$0xff]  ;;  %v3166_v16 = vld [vmem:[#allocation39_spill] sm:$0xff] }
 0x18d   :  { %v1864_v7 = vpop.eup %1863 }
 0x18e   :  { %v1546_v3 = vadd.f32 -1.0, %v1864_v7  ;;  %v836_v47 = vmul.f32 %v707_v48, %v697_v49  ;;  %v3168_v48 = vld [vmem:[#allocation28_spill] sm:$0xff]  ;;  %v3171_v7 = vld [vmem:[#allocation29_spill] sm:$0xff] }
 0x18f   :  { %v3169_v49 = vld [vmem:[#allocation40_spill] sm:$0xff]  ;;  %v3229_v44 = vand.u32 4294901760, %v3171_v7 }
 0x190   :  { %v698_v28 = vadd.f32 %v1546_v3, %v639_v11  ;;  %v2575_v13 = vand.u32 4294901760, %v836_v47  ;;  %v3172_v11 = vld [vmem:[#allocation42_spill] sm:$0xff] }
 0x191   :  { %v3174_v3 = vld [vmem:[#allocation30_spill] sm:$0xff] }
 0x192   :  { %v837_v2 = vmul.f32 %v708_v15, %v698_v28  ;;  %v2578_v36 = vsub.f32 %v836_v47, %v2575_v13  ;;  %v3175_v47 = vld [vmem:[#allocation44_spill] sm:$0xff]  ;;  %v3177_v15 = vld [vmem:[#allocation33_spill] sm:$0xff] }
 0x193   :  { %v3178_v28 = vld [vmem:[#allocation48_spill] sm:$0xff] }
 0x194   :  { %v2580_v27 = vand.u32 4294901760, %v837_v2  ;;  %v910_v23 = vand.u32 4294901760, %v2578_v36 }
 0x196   :  { %1111 = vmatprep.mubr.f32.mxu1 %v2580_v27  ;;  %v903_v46 = vsub.f32 %v837_v2, %v2580_v27  ;;  %v911_v9 = vsub.f32 %v2578_v36, %v910_v23  ;;  %v3180_v2 = vld [vmem:[#allocation35_spill] sm:$0xff] }
 0x197   :  { %1113 = vmatmul.mubr.f32.vlgmr.msra.gmra.mxu1 %v2575_v13 }
 0x198   :  { %1749 = vmatpush3.msk.msra.mxu1 %vm1994_vm6, %v3101_v50  ;;  %v904_v39 = vand.u32 4294901760, %v903_v46  ;;  %v912_v60 = vand.u32 4294901760, %v911_v9  ;;  %v3184_v9 = vld [vmem:[#allocation17_spill] sm:$0xff] }
 0x199   :  { %1750 = vmatprep.subr.msk.mxu1 %vm2005_vm7, %v3101_v50 }
 0x19a   :  { %1751 = vmatpush3.msk.msra.mxu1 %vm2015_vm8, %v3101_v50  ;;  %1291 = vmatprep.mubr.f32.mxu1 %v904_v39  ;;  %v905_v53 = vsub.f32 %v903_v46, %v904_v39  ;;  %v3183_v39 = vld [vmem:[#allocation37_spill] sm:$0xff] }
 0x19b   :  { %1752 = vmatprep.subr.msk.mxu1 %vm2026_vm9, %v3101_v50 }
 0x19c   :  { %1753 = vmatpush3.msk.msra.mxu1 %vm2037_vm10, %v3101_v50  ;;  %v906_v57 = vand.u32 4294901760, %v905_v53  ;;  %v3186_v53 = vld [vmem:[#allocation38_spill] sm:$0xff] }
 0x19d   :  { %1754 = vmatprep.subr.msk.mxu1 %vm2066_vm11, %v3101_v50 }
 0x19e   :  { %1755 = vmatpush3.msk.msra.mxu1 %vm2082_vm12, %v3101_v50  ;;  %907 = vmatprep.mubr.f32.mxu0 %v906_v57  ;;  %v3187_v57 = vld [vmem:[#allocation41_spill] sm:$0xff] }
 0x19f   :  { %1756 = vmatprep.subr.msk.mxu1 %vm2115_vm13, %v3101_v50  ;;  %913 = vmatmul.mubr.f32.vlgmr.msra.gmra.mxu0 %v912_v60  ;;  %v3188_v60 = vld [vmem:[#allocation43_spill] sm:$0xff] }
 0x1a0   :  { %1714 = vmatpush3.msra.mxu0 %v2009_v1  ;;  %1757 = vmatpush3.msk.msra.mxu1 %vm2120_vm14, %v3101_v50  ;;  %v3198_v1 = vand.u32 4294901760, %v2045_v20 }
 0x1a1   :  { %1715 = vmatprep.subr.mxu0 %v2020_v10  ;;  %1216 = vmatprep.mubr.f32.mxu0 %v903_v46  ;;  %v3181_v46 = vld [vmem:[#allocation47_spill] sm:$0xff]  ;;  %v3199_v10 = vand.u32 4294901760, %v2054_v24 }
 0x1a2   :  { %1758 = vmatprep.subr.msk.mxu1 %vm2134_vm15, %v3101_v50  ;;  %1716 = vmatpush3.msra.mxu0 %v2031_v14  ;;  %v3201_v14 = vand.u32 4294901760, %v2079_v40 }
 0x1a3   :  { %1759 = vmatpush3.msk.msra.mxu1 %vm2157_vm1, %v3101_v50  ;;  %1717 = vmatprep.subr.mxu0 %v2045_v20  ;;  %v3203_v20 = vand.u32 4294901760, %v2099_v51 }
 0x1a4   :  { %1760 = vmatprep.subr.msk.mxu1 %vm3139_vm4, %v3101_v50  ;;  %1718 = vmatpush3.msra.mxu0 %v2054_v24  ;;  %v3205_v24 = vand.u32 4294901760, %v2144_v25 }
 0x1a5   :  { %1761 = vmatpush3.msk.msra.mxu1 %vm3140_vm5, %v3101_v50  ;;  %1719 = vmatprep.subr.mxu0 %v2079_v40  ;;  %vm3144_vm5 = vnez %v3077_v38  ;;  %v3207_v40 = vand.u32 4294901760, %v2146_v26 }
 0x1a6   :  { %1762 = vmatprep.subr.msk.mxu1 %vm3141_vm3, %v3101_v50  ;;  %1720 = vmatpush3.msra.mxu0 %v2099_v51  ;;  %vm3145_vm3 = vnez %v3081_v52  ;;  %v3209_v51 = vand.u32 4294901760, %v2154_v29 }
 0x1a7   :  { %1763 = vmatpush3.msk.msra.mxu1 %vm3142_vm0, %v3101_v50  ;;  %1721 = vmatprep.subr.mxu0 %v2144_v25  ;;  %vm3146_vm0 = vnez %v3083_v37  ;;  %v3217_v25 = vand.u32 4294901760, %v3153_v31 }
 0x1a8   :  { %1764 = vmatprep.subr.msk.mxu1 %vm3143_vm2, %v3101_v50  ;;  %1722 = vmatpush3.msra.mxu0 %v2146_v26  ;;  %vm3149_vm2 = vnez %v3148_v55  ;;  %v3219_v26 = vand.u32 4294901760, %v3156_v18 }
 0x1a9   :  { %1765 = vmatpush3.msk.msra.mxu1 %vm3144_vm5, %v3101_v50  ;;  %1723 = vmatprep.subr.mxu0 %v2154_v29  ;;  %vm3152_vm5 = vnez %v3151_v34  ;;  %v3221_v29 = vand.u32 4294901760, %v3159_v22 }
 0x1aa   :  { %1766 = vmatprep.subr.msk.mxu1 %vm3145_vm3, %v3101_v50  ;;  %1724 = vmatpush3.msra.mxu0 %v2173_v41  ;;  %vm3155_vm3 = vnez %v3154_v62  ;;  %v3227_v41 = vand.u32 4294901760, %v3168_v48 }
 0x1ab   :  { %1767 = vmatpush3.msk.msra.mxu1 %vm3146_vm0, %v3101_v50  ;;  %1725 = vmatprep.subr.mxu0 %v3147_v43  ;;  %vm3158_vm0 = vnez %v3157_v56  ;;  %v3239_v43 = vand.u32 4294901760, %v3190_v58 }
 0x1ac   :  { %1768 = vmatprep.subr.msk.mxu1 %vm3149_vm2, %v3101_v50  ;;  %1726 = vmatpush3.msra.mxu0 %v3150_v6  ;;  %vm3161_vm2 = vnez %v3160_v61 }
 0x1ad   :  { %1769 = vmatpush3.msk.msra.mxu1 %vm3152_vm5, %v3101_v50  ;;  %1727 = vmatprep.subr.mxu0 %v3153_v31  ;;  %vm3164_vm5 = vnez %v3163_v32 }
 0x1ae   :  { %1770 = vmatprep.subr.msk.mxu1 %vm3155_vm3, %v3101_v50  ;;  %1728 = vmatpush3.msra.mxu0 %v3156_v18  ;;  %vm3167_vm3 = vnez %v3166_v16 }
 0x1af   :  { %1771 = vmatpush3.msk.msra.mxu1 %vm3158_vm0, %v3101_v50  ;;  %1729 = vmatprep.subr.mxu0 %v3159_v22  ;;  %vm3170_vm0 = vnez %v3169_v49 }
 0x1b0   :  { %1772 = vmatprep.subr.msk.mxu1 %vm3161_vm2, %v3101_v50  ;;  %1730 = vmatpush3.msra.mxu0 %v3162_v8  ;;  %vm3173_vm2 = vnez %v3172_v11 }
 0x1b1   :  { %1773 = vmatpush3.msk.msra.mxu1 %vm3164_vm5, %v3101_v50  ;;  %1731 = vmatprep.subr.mxu0 %v3165_v19  ;;  %vm3176_vm5 = vnez %v3175_v47 }
 0x1b2   :  { %1774 = vmatprep.subr.msk.mxu1 %vm3167_vm3, %v3101_v50  ;;  %1732 = vmatpush3.msra.mxu0 %v3168_v48  ;;  %vm3179_vm3 = vnez %v3178_v28 }
 0x1b3   :  { %1775 = vmatpush3.msk.msra.mxu1 %vm3170_vm0, %v3101_v50  ;;  %1733 = vmatprep.subr.mxu0 %v3171_v7  ;;  %vm3182_vm0 = vnez %v3181_v46 }
 0x1b4   :  { %1776 = vmatprep.subr.msk.mxu1 %vm3173_vm2, %v3101_v50  ;;  %1734 = vmatpush3.msra.mxu0 %v3174_v3 }
 0x1b5   :  { %1777 = vmatpush3.msk.msra.mxu1 %vm3176_vm5, %v3101_v50  ;;  %1735 = vmatprep.subr.mxu0 %v3177_v15  ;;  %vm3185_vm5 = vnez %v3184_v9  ;;  %v3194_v9 = vand.u32 4294901760, %v3193_v12 }
 0x1b6   :  { %1778 = vmatprep.subr.msk.mxu1 %vm3179_vm3, %v3101_v50  ;;  %1736 = vmatpush3.msra.mxu0 %v3180_v2 }
 0x1b7   :  { %1779 = vmatpush3.msk.msra.mxu1 %vm3182_vm0, %v3101_v50  ;;  %1737 = vmatprep.subr.mxu0 %v3183_v39 }
 0x1b8   :  { %1295 = vmatmul.mubr.f32.vlgmr.msra.gmra.mxu1 %v910_v23  ;;  %1818 = vmatprep.subr.msk.mxu1 %vm3185_vm5, %v3101_v50  ;;  %v3189_v23 = vld [vmem:[#allocation45_spill] sm:$0xff]  ;;  %vm3224_vm5 = vnez %v3163_v32 }
 0x1b9   :  { %1738 = vmatpush3.msra.mxu0 %v3186_v53  ;;  %1819 = vmatpush3.msk.msra.mxu1 %vm1994_vm6, %v3101_v50  ;;  %vm3200_vm6 = vnez %v3065_v45  ;;  %v3230_v45 = vand.u32 4294901760, %v3174_v3 }
 0x1ba   :  { %1501 = vmatprep.mubr.f32.mxu1 %v2580_v27  ;;  %1739 = vmatprep.subr.mxu0 %v3187_v57 }
 0x1bb   :  { %1820 = vmatprep.subr.msk.mxu1 %vm2005_vm7, %v3101_v50  ;;  %1740 = vmatpush3.msra.mxu0 %v3188_v60  ;;  %vm3202_vm7 = vnez %v3069_v54  ;;  %v3232_v54 = vand.u32 4294901760, %v3177_v15 }
 0x1bc   :  { %1821 = vmatpush3.msk.msra.mxu1 %vm2015_vm8, %v3101_v50  ;;  %1741 = vmatprep.subr.mxu0 %v3189_v23  ;;  %vm3204_vm8 = vnez %v3071_v59  ;;  %v3233_v59 = vand.u32 4294901760, %v3180_v2 }
 0x1bd   :  { %1822 = vmatprep.subr.msk.mxu1 %vm2026_vm9, %v3101_v50  ;;  %1742 = vmatpush3.msra.mxu0 %v3190_v58  ;;  %vm3206_vm9 = vnez %v3075_v35  ;;  %v3234_v35 = vand.u32 4294901760, %v3183_v39 }
 0x1be   :  { %1823 = vmatpush3.msk.msra.mxu1 %vm2037_vm10, %v3101_v50  ;;  %1743 = vmatprep.subr.mxu0 %v3191_v63  ;;  %vm3208_vm10 = vnez %v3077_v38  ;;  %v3235_v38 = vand.u32 4294901760, %v3186_v53 }
 0x1bf   :  { %1824 = vmatprep.subr.msk.mxu1 %vm2066_vm11, %v3101_v50  ;;  %1744 = vmatpush3.msra.mxu0 %v3192_v5  ;;  %vm3210_vm11 = vnez %v3081_v52  ;;  %v3236_v52 = vand.u32 4294901760, %v3187_v57 }
 0x1c0   :  { %1825 = vmatpush3.msk.msra.mxu1 %vm2082_vm12, %v3101_v50  ;;  %1219 = vmatmul.mubr.f32.vlgmr.msra.gmra.mxu0 %v2578_v36  ;;  %vm3212_vm12 = vnez %v3083_v37  ;;  %v3225_v37 = vand.u32 4294901760, %v3165_v19  ;;  %v3237_v36 = vand.u32 4294901760, %v3188_v60 }
 0x1c1   :  { %1783 = vmatprep.subr.mxu0 %v3194_v9  ;;  %1826 = vmatprep.subr.msk.mxu1 %vm2115_vm13, %v3101_v50  ;;  %vm3214_vm13 = vnez %v3148_v55  ;;  %v3241_v55 = vand.u32 4294901760, %v3192_v5 }
 0x1c2   :  { %1784 = vmatpush3.msra.mxu0 %v3195_v17  ;;  %1429 = vmatprep.mubr.f32.mxu0 %v2580_v27  ;;  %v3238_v27 = vand.u32 4294901760, %v3189_v23 }
 0x1c3   :  { %1827 = vmatpush3.msk.msra.mxu1 %vm2120_vm14, %v3101_v50  ;;  %1785 = vmatprep.subr.mxu0 %v3196_v33  ;;  %vm3216_vm14 = vnez %v3151_v34 }
 0x1c4   :  { %1828 = vmatprep.subr.msk.mxu1 %vm2134_vm15, %v3101_v50  ;;  %1786 = vmatpush3.msra.mxu0 %v3197_v42  ;;  %vm3218_vm15 = vnez %v3154_v62 }
 0x1c5   :  { %1829 = vmatpush3.msk.msra.mxu1 %vm2157_vm1, %v3101_v50  ;;  %1787 = vmatprep.subr.mxu0 %v3198_v1  ;;  %vm3220_vm1 = vnez %v3157_v56 }
 0x1c6   :  { %1830 = vmatprep.subr.msk.mxu1 %vm3139_vm4, %v3101_v50  ;;  %1788 = vmatpush3.msra.mxu0 %v3199_v10  ;;  %vm3222_vm4 = vnez %v3160_v61 }
 0x1c7   :  { %1831 = vmatpush3.msk.msra.mxu1 %vm3200_vm6, %v3101_v50  ;;  %1789 = vmatprep.subr.mxu0 %v3201_v14  ;;  %vm3226_vm6 = vnez %v3166_v16 }
 0x1c8   :  { %1832 = vmatprep.subr.msk.mxu1 %vm3202_vm7, %v3101_v50  ;;  %1790 = vmatpush3.msra.mxu0 %v3203_v20  ;;  %vm3228_vm7 = vnez %v3169_v49 }
 0x1c9   :  { %1833 = vmatpush3.msk.msra.mxu1 %vm3204_vm8, %v3101_v50  ;;  %1791 = vmatprep.subr.mxu0 %v3205_v24  ;;  %vm3231_vm8 = vnez %v3175_v47 }
 0x1ca   :  { %1834 = vmatprep.subr.msk.mxu1 %vm3206_vm9, %v3101_v50  ;;  %1792 = vmatpush3.msra.mxu0 %v3207_v40 }
 0x1cb   :  { %1835 = vmatpush3.msk.msra.mxu1 %vm3208_vm10, %v3101_v50  ;;  %1793 = vmatprep.subr.mxu0 %v3209_v51 }
 0x1cc   :  { %1836 = vmatprep.subr.msk.mxu1 %vm3210_vm11, %v3101_v50  ;;  %1794 = vmatpush3.msra.mxu0 %v3211_v0 }
 0x1cd   :  { %1837 = vmatpush3.msk.msra.mxu1 %vm3212_vm12, %v3101_v50  ;;  %1795 = vmatprep.subr.mxu0 %v3213_v4 }
 0x1ce   :  { %1838 = vmatprep.subr.msk.mxu1 %vm3214_vm13, %v3101_v50  ;;  %1796 = vmatpush3.msra.mxu0 %v3215_v21 }
 0x1cf   :  { %1839 = vmatpush3.msk.msra.mxu1 %vm3216_vm14, %v3101_v50  ;;  %1797 = vmatprep.subr.mxu0 %v3217_v25 }
 0x1d0   :  { %1840 = vmatprep.subr.msk.mxu1 %vm3218_vm15, %v3101_v50  ;;  %1798 = vmatpush3.msra.mxu0 %v3219_v26 }
 0x1d1   :  { %1841 = vmatpush3.msk.msra.mxu1 %vm3220_vm1, %v3101_v50  ;;  %1799 = vmatprep.subr.mxu0 %v3221_v29 }
 0x1d2   :  { %1842 = vmatprep.subr.msk.mxu1 %vm3222_vm4, %v3101_v50  ;;  %1800 = vmatpush3.msra.mxu0 %v3223_v30 }
 0x1d3   :  { %1843 = vmatpush3.msk.msra.mxu1 %vm3224_vm5, %v3101_v50  ;;  %1801 = vmatprep.subr.mxu0 %v3225_v37 }
 0x1d4   :  { %1844 = vmatprep.subr.msk.mxu1 %vm3226_vm6, %v3101_v50  ;;  %1802 = vmatpush3.msra.mxu0 %v3227_v41 }
 0x1d5   :  { %1845 = vmatpush3.msk.msra.mxu1 %vm3228_vm7, %v3101_v50  ;;  %1803 = vmatprep.subr.mxu0 %v3229_v44 }
 0x1d6   :  { %1846 = vmatprep.subr.msk.mxu1 %vm3173_vm2, %v3101_v50  ;;  %1804 = vmatpush3.msra.mxu0 %v3230_v45 }
 0x1d7   :  { %1847 = vmatpush3.msk.msra.mxu1 %vm3231_vm8, %v3101_v50  ;;  %1805 = vmatprep.subr.mxu0 %v3232_v54 }
 0x1d8   :  { %1848 = vmatprep.subr.msk.mxu1 %vm3179_vm3, %v3101_v50  ;;  %1806 = vmatpush3.msra.mxu0 %v3233_v59  ;;  %vm1508_vm3 = vcmask 64512  }
 0x1d9   :  { %1849 = vmatpush3.msk.msra.mxu1 %vm3182_vm0, %v3101_v50  ;;  %1807 = vmatprep.subr.mxu0 %v3234_v35  ;;  %v3240_v50 = vand.u32 4294901760, %v3191_v63 }
 0x1da   :  { %1503 = vmatmul.mubr.f32.vlgmr.msra.gmra.mxu1 %v2575_v13  ;;  %1808 = vmatpush3.msra.mxu0 %v3235_v38 }
 0x1db   :  { %1809 = vmatprep.subr.mxu0 %v3236_v52 }
 0x1dc   :  { %1810 = vmatpush3.msra.mxu0 %v3237_v36 }
 0x1dd   :  { %1811 = vmatprep.subr.mxu0 %v3238_v27 }
 0x1de   :  { %1812 = vmatpush3.msra.mxu0 %v3239_v43 }
 0x1df   :  { %1813 = vmatprep.subr.mxu0 %v3240_v50 }
 0x1e0   :  { %1814 = vmatpush3.msra.mxu0 %v3241_v55 }
 0x1e1   :  { %1431 = vmatmul.mubr.f32.vlgmr.msra.gmra.mxu0 %v2575_v13 }
 0x257   :  { %v1710_v34 = vpop.f32.mrf.mxu1 }
 0x259   :  { %v1711_v18 = vpop.f32.mrf.mxu1 }
 0x25a   :  { %v1712_v8 = vadd.f32 %v1711_v18, %v1710_v34 }
 0x25f   :  { %v1675_v6 = vpop.f32.mrf.mxu0 }
 0x261   :  { %v1676_v31 = vpop.f32.mrf.mxu0 }
 0x262   :  { %v1677_v61 = vadd.f32 %v1676_v31, %v1675_v6 }
 0x264   :  { %v1115_v16 = vadd.f32 %v1712_v8, %v1677_v61 }
 0x278   :  { %v1780_v56 = vpop.f32.mrf.mxu1 }
 0x27a   :  { %v1781_v19 = vpop.f32.mrf.mxu1 }
 0x27b   :  { %v1782_v11 = vadd.f32 %v1781_v19, %v1780_v56 }
 0x280   :  { %v1745_v62 = vpop.f32.mrf.mxu0 }
 0x282   :  { %v1746_v22 = vpop.f32.mrf.mxu0 }
 0x283   :  { %v1747_v32 = vadd.f32 %v1746_v22, %v1745_v62 }
 0x285   :  { %v1221_v49 = vadd.f32 %v1747_v32, %v1115_v16 }
 0x287   :  { %v1297_v15 = vadd.f32 %v1782_v11, %v1221_v49 }
 0x29a   :  { %v1850_v48 = vpop.f32.mrf.mxu1 }
 0x29c   :  { %v1851_v3 = vpop.f32.mrf.mxu1 }
 0x29d   :  { %v1852_v28 = vadd.f32 %v1851_v3, %v1850_v48 }
 0x2a1   :  { %v1815_v7 = vpop.f32.mrf.mxu0 }
 0x2a3   :  { %v1816_v47 = vpop.f32.mrf.mxu0 }
 0x2a4   :  { %v1817_v13 = vadd.f32 %v1816_v47, %v1815_v7 }
 0x2a6   :  { %v1433_v2 = vadd.f32 %v1817_v13, %v1297_v15 }
 0x2a8   :  { %v1505_v46 = vadd.f32 %v1852_v28, %v1433_v2 }
 0x2aa   :  { %v1510_v39 = vsel %vm1508_vm3, %v1505_v46, 0.0  ;;  %1509 = vst.msk [vmem:[#allocation12] sm:$0xff] %vm1508_vm3, %v1505_v46 }
 0x2ab   :  { %1511 = vadd.xlane.f32.xlu0 %v1510_v39 }
 0x2ac   :  { %1876 = shalt.err (!%p1873_p4)
}
 0x2ad   :  { %1524 = dma.vmem_to_hbm [thread:$0]  %s1522_s9, 128, %s2890_s4, [#allocation13]   ;;  %vm1513_vm0 = vcmask 7168  }
 0x334   :  { %v1512_v53 = vpop.xlane.xlu0 %1511 }
 0x335   :  { %1514 = vst.msk [vmem:[%s2891_s5] sm:$0xff] %vm1513_vm0, %v1512_v53 }
 0x336   :  { %1885 = dma.done.wait [#allocation13], 128  }
 0x337   :  { %1886 = vsyncadd [#allocation13], 4294967168 }
 0x338   :  { %1532 = vsyncpa [#allocation13], 1 }

</bundles_post_ra>
